<compile_context>
chip_gen: v6e
topology: v6e:2x2x1
jax: 0.10.0
libtpu: 0.0.40
codegen_flags: <defaults>
</compile_context>

<pallas_src>
import jax
import jax.numpy as jnp
from jax.experimental import pallas as pl
from jax.experimental.pallas import tpu as pltpu


# ----------------------------------------------------------------------------
# Kernels
# ----------------------------------------------------------------------------
def _ar_kernel_ftile(x_ref, w_ref, b_ref, o_ref):
    # x_ref: (W, tf) lane-dense slice of x[b]   (batch dim squeezed by BlockSpec)
    # w_ref: (H, W)  full weight, resident across grid steps
    # b_ref: (H, 1)  full bias (f32), resident
    # o_ref: (H, tf) lane-dense slice of out[b]
    acc = jnp.dot(w_ref[...], x_ref[...], preferred_element_type=jnp.float32)
    o_ref[...] = (acc + b_ref[...]).astype(o_ref.dtype)


def _ar_kernel_btile(x_ref, w_ref, b_ref, o_ref):
    # x_ref: (bt, W, F) contiguous batch slab in the ORIGINAL layout
    # w_ref: (H, W)     full weight, resident
    # b_ref: (H, 1)     full bias (f32), resident
    # o_ref: (bt, H, F) output slab in the ORIGINAL output layout
    w = w_ref[...]
    b = b_ref[...]
    bt = x_ref.shape[0]
    for i in range(bt):  # bt is small & static -> cheap unroll
        acc = jnp.dot(w, x_ref[i], preferred_element_type=jnp.float32)
        o_ref[i] = (acc + b).astype(o_ref.dtype)


# ----------------------------------------------------------------------------
# Generation-aware tile selection
# ----------------------------------------------------------------------------
def _round_up(x, m):
    return ((x + m - 1) // m) * m


def _tpu_budget():
    """(vmem_budget_bytes, num_tensorcores) with conservative fallbacks."""
    vmem = 64 * 1024 * 1024   # safe for v7x (64 MiB) and smaller than v5e/v6e
    cores = 1
    try:
        info = pltpu.get_tpu_info()
        vmem = int(getattr(info, "vmem_capacity_bytes", vmem) or vmem)
        cores = int(getattr(info, "num_cores", cores) or cores)
    except Exception:
        pass
    # Keep the double-buffered working set well under the scoped-VMEM default
    # on every generation (16 MiB v5e, 32 MiB v6e/v7x).
    budget = max(2 * 1024 * 1024, min(vmem, 128 * 1024 * 1024) // 8)
    return budget, cores


def _choose_lane_tile(F, W, H, itemsize, lane_tile, vmem_budget, cores, B):
    """Lane tile along F for the F>=128 path (multiple of 128)."""
    tf = min(_round_up(lane_tile, 128), _round_up(F, 128))
    # Double-buffered (W, tf) input + (H, tf) output blocks must fit the budget.
    cap = vmem_budget // (2 * (W + H) * itemsize)
    cap = max(128, (cap // 128) * 128)
    tf = max(128, min(tf, cap))
    # Multi-core (v7x): give each TensorCore >= 2 "parallel" grid steps so the
    # BlockSpec pipeline can hide DMA latency; never split on single-TC chips.
    if cores > 1:
        while tf > 128 and B * pl.cdiv(F, tf) < 2 * cores:
            tf -= 128
    return int(tf)


def _choose_batch_tile(B, W, F, H, itemsize, vmem_budget, cores,
                       target_out_bytes=512 * 1024, max_unroll=64):
    """Batch tile for the small-F path."""
    per_batch_out = max(1, H * F * itemsize)
    bt = max(1, target_out_bytes // per_batch_out)
    bt = min(bt, B, max_unroll)
    per_batch_bytes = (W * F + H * F) * itemsize
    cap = max(1, vmem_budget // (2 * per_batch_bytes))
    bt = min(bt, cap)
    if cores > 1:
        while bt > 1 and pl.cdiv(B, bt) < 2 * cores:
            bt -= 1
    return int(bt)


# ----------------------------------------------------------------------------
# Forward
# ----------------------------------------------------------------------------
def ar_forward(x, weight, bias, *, lane_tile=2048, compute_dtype=None,
               force_pallas=False, small_n_threshold=512):
    """x: (B, window, F); weight: (hidden, window); bias: (hidden,)
    returns: (B, hidden, F)  -- matches AR.forward output layout."""
    B, W, F = x.shape
    H = weight.shape[0]
    out_dtype = x.dtype

    # Small-problem fast path: pallas_call fixed costs dominate below ~512
    # lanes of work; the XLA einsum is strictly faster there.
    if (B * F < small_n_threshold) and not force_pallas:
        out = jnp.einsum("hw,bwf->bhf", weight, x) + bias[None, :, None]
        return out.astype(out_dtype)

    # Optional reduced-precision data path (accumulation stays f32).
    if compute_dtype is not None:
        xk = x.astype(compute_dtype)
        wk = weight.astype(compute_dtype)
    else:
        xk, wk = x, weight
    k_itemsize = jnp.dtype(xk.dtype).itemsize
    o_itemsize = jnp.dtype(out_dtype).itemsize
    bias2d = bias.reshape(H, 1).astype(jnp.float32)

    vmem_budget, cores = _tpu_budget()

    # Advisory: this call is memory-bound; help XLA schedule around it.
    cost = pl.CostEstimate(
        flops=2 * B * H * W * F,
        transcendentals=0,
        bytes_accessed=(B * W * F * k_itemsize + H * W * k_itemsize
                        + H * 4 + B * H * F * o_itemsize),
    )

    if F >= 128:
        # Direct-layout, lane-tiled path: no transposes anywhere.
        tf = _choose_lane_tile(F, W, H, max(k_itemsize, o_itemsize),
                               lane_tile, vmem_budget, cores, B)
        grid = (B, pl.cdiv(F, tf))
        out = pl.pallas_call(
            _ar_kernel_ftile,
            out_shape=jax.ShapeDtypeStruct((B, H, F), out_dtype),
            grid_spec=pltpu.PrefetchScalarGridSpec(
                num_scalar_prefetch=0,
                grid=grid,
                in_specs=[
                    pl.BlockSpec((None, W, tf), lambda b, j: (b, 0, j)),
                    pl.BlockSpec((H, W), lambda b, j: (0, 0)),
                    pl.BlockSpec((H, 1), lambda b, j: (0, 0)),
                ],
                out_specs=pl.BlockSpec((None, H, tf), lambda b, j: (b, 0, j)),
            ),
            compiler_params=pltpu.CompilerParams(
                dimension_semantics=("parallel", "parallel")),
            cost_estimate=cost,
        )(xk, wk, bias2d)
        return out

    # Small-F path: batch-tiled contiguous slabs in the original layouts.
    bt = _choose_batch_tile(B, W, F, H, max(k_itemsize, o_itemsize),
                            vmem_budget, cores)
    grid = (pl.cdiv(B, bt),)
    out = pl.pallas_call(
        _ar_kernel_btile,
        out_shape=jax.ShapeDtypeStruct((B, H, F), out_dtype),
        grid_spec=pltpu.PrefetchScalarGridSpec(
            num_scalar_prefetch=0,
            grid=grid,
            in_specs=[
                pl.BlockSpec((bt, W, F), lambda i: (i, 0, 0)),
                pl.BlockSpec((H, W), lambda i: (0, 0)),
                pl.BlockSpec((H, 1), lambda i: (0, 0)),
            ],
            out_specs=pl.BlockSpec((bt, H, F), lambda i: (i, 0, 0)),
        ),
        compiler_params=pltpu.CompilerParams(
            dimension_semantics=("parallel",)),
        cost_estimate=cost,
    )(xk, wk, bias2d)
    return out


# ----------------------------------------------------------------------------
# Self-test
# ----------------------------------------------------------------------------
if __name__ == "__main__":
    key = jax.random.PRNGKey(0)
    kx, kw, kb, kx2 = jax.random.split(key, 4)

    # Small shapes consistent with the module.
    B, window, n_features, hidden = 2, 8, 16, 32
    bound = 1.0 / (window ** 0.5)
    x = jax.random.normal(kx, (B, window, n_features), dtype=jnp.float32)
    weight = jax.random.uniform(kw, (hidden, window), minval=-bound,
                                maxval=bound, dtype=jnp.float32)
    bias = jax.random.uniform(kb, (hidden,), minval=-bound,
                              maxval=bound, dtype=jnp.float32)

    # Pure-JAX reference of the PyTorch forward (transpose->linear->transpose).
    ref = jnp.einsum("hw,bwf->bhf", weight, x) + bias[None, :, None]

    # 1) Batch-tiled Pallas path (F < 128), forced so the kernel actually runs.
    out = jax.block_until_ready(ar_forward(x, weight, bias, force_pallas=True))
    assert out.shape == (B, hidden, n_features)
    assert jnp.allclose(out, ref, atol=1e-5, rtol=1e-5)

    # 2) Direct-layout lane-tiled Pallas path (F >= 128): no wrapper transposes.
    F2 = 128
    x2 = jax.random.normal(kx2, (B, window, F2), dtype=jnp.float32)
    ref2 = jnp.einsum("hw,bwf->bhf", weight, x2) + bias[None, :, None]
    out2 = jax.block_until_ready(ar_forward(x2, weight, bias, force_pallas=True))
    assert out2.shape == (B, hidden, F2)
    assert jnp.allclose(out2, ref2, atol=1e-5, rtol=1e-5)

    # 3) Auto dispatch (small-N einsum fast path) must match as well.
    out3 = jax.block_until_ready(ar_forward(x, weight, bias))
    assert jnp.allclose(out3, ref, atol=1e-5, rtol=1e-5)

    print("KERNEL_OK")
</pallas_src>

<mosaic_0001>
module attributes {stable_mosaic.version = 11 : i64} {
  func.func @_ar_kernel_btile(%arg0: i32, %arg1: memref<2x8x16xf32, #tpu.memory_space<vmem>>, %arg2: memref<32x8xf32, #tpu.memory_space<vmem>>, %arg3: memref<32x1xf32, #tpu.memory_space<vmem>>, %arg4: memref<2x32x16xf32, #tpu.memory_space<vmem>>) attributes {dimension_semantics = [#tpu.dimension_semantics<parallel>], iteration_bounds = array<i64: 1>, scalar_prefetch = 0 : i64, scratch_operands = 0 : i64, tpu.core_type = #tpu.core_type<tc>, window_params = [{transform_indices = @transform_0, window_bounds = array<i64: 2, 8, 16>}, {pipeline_mode = #tpu.pipeline_mode<synchronous>, transform_indices = @transform_1, window_bounds = array<i64: 32, 8>}, {pipeline_mode = #tpu.pipeline_mode<synchronous>, transform_indices = @transform_2, window_bounds = array<i64: 32, 1>}, {transform_indices = @transform_3, window_bounds = array<i64: 2, 32, 16>}]} {
    %c0 = arith.constant 0 : index
    %c0_0 = arith.constant 0 : index
    %0 = vector.load %arg2[%c0, %c0_0] : memref<32x8xf32, #tpu.memory_space<vmem>>, vector<32x8xf32>
    %c0_1 = arith.constant 0 : index
    %c0_2 = arith.constant 0 : index
    %1 = vector.load %arg3[%c0_1, %c0_2] : memref<32x1xf32, #tpu.memory_space<vmem>>, vector<32x1xf32>
    %c0_3 = arith.constant 0 : index
    %c0_4 = arith.constant 0 : index
    %c0_5 = arith.constant 0 : index
    %2 = vector.load %arg1[%c0_3, %c0_4, %c0_5] : memref<2x8x16xf32, #tpu.memory_space<vmem>>, vector<1x8x16xf32>
    %3 = vector.shape_cast %2 : vector<1x8x16xf32> to vector<8x16xf32>
    %cst = arith.constant dense<0.000000e+00> : vector<32x16xf32>
    %4 = tpu.matmul %0, %3, %cst {dimension_numbers = #tpu.dot_dimension_numbers<[1], [0], [0], [1], [0, 0, 1, 1], [], []>} : vector<32x8xf32>, vector<8x16xf32>, vector<32x16xf32> -> vector<32x16xf32>
    %5 = vector.broadcast %1 : vector<32x1xf32> to vector<32x16xf32>
    %6 = arith.addf %4, %5 : vector<32x16xf32>
    %c0_6 = arith.constant 0 : index
    %c0_7 = arith.constant 0 : index
    %c0_8 = arith.constant 0 : index
    %7 = vector.load %arg4[%c0_6, %c0_7, %c0_8] : memref<2x32x16xf32, #tpu.memory_space<vmem>>, vector<1x32x16xf32>
    %8 = vector.shape_cast %7 : vector<1x32x16xf32> to vector<32x16xf32>
    %9 = vector.shape_cast %6 : vector<32x16xf32> to vector<1x32x16xf32>
    tpu.vector_store %arg4[%c0_6, %c0_7, %c0_8], %9 {strides = array<i32>} : memref<2x32x16xf32, #tpu.memory_space<vmem>>, vector<1x32x16xf32>,
    %c1 = arith.constant 1 : index
    %c0_9 = arith.constant 0 : index
    %c0_10 = arith.constant 0 : index
    %10 = vector.load %arg1[%c1, %c0_9, %c0_10] : memref<2x8x16xf32, #tpu.memory_space<vmem>>, vector<1x8x16xf32>
    %11 = vector.shape_cast %10 : vector<1x8x16xf32> to vector<8x16xf32>
    %cst_11 = arith.constant dense<0.000000e+00> : vector<32x16xf32>
    %12 = tpu.matmul %0, %11, %cst_11 {dimension_numbers = #tpu.dot_dimension_numbers<[1], [0], [0], [1], [0, 0, 1, 1], [], []>} : vector<32x8xf32>, vector<8x16xf32>, vector<32x16xf32> -> vector<32x16xf32>
    %13 = vector.broadcast %1 : vector<32x1xf32> to vector<32x16xf32>
    %14 = arith.addf %12, %13 : vector<32x16xf32>
    %c1_12 = arith.constant 1 : index
    %c0_13 = arith.constant 0 : index
    %c0_14 = arith.constant 0 : index
    %15 = vector.load %arg4[%c1_12, %c0_13, %c0_14] : memref<2x32x16xf32, #tpu.memory_space<vmem>>, vector<1x32x16xf32>
    %16 = vector.shape_cast %15 : vector<1x32x16xf32> to vector<32x16xf32>
    %17 = vector.shape_cast %14 : vector<32x16xf32> to vector<1x32x16xf32>
    tpu.vector_store %arg4[%c1_12, %c0_13, %c0_14], %17 {strides = array<i32>} : memref<2x32x16xf32, #tpu.memory_space<vmem>>, vector<1x32x16xf32>,
    return
  }
  func.func @transform_0(%arg0: i32) -> (i32, i32, i32) {
    %c0_i32 = arith.constant 0 : i32
    %c0_i32_0 = arith.constant 0 : i32
    %c0_i32_1 = arith.constant 0 : i32
    return %arg0, %c0_i32, %c0_i32_0 : i32, i32, i32
  }
  func.func @transform_1(%arg0: i32) -> (i32, i32) {
    %c0_i32 = arith.constant 0 : i32
    %c0_i32_0 = arith.constant 0 : i32
    %c0_i32_1 = arith.constant 0 : i32
    return %c0_i32, %c0_i32_0 : i32, i32
  }
  func.func @transform_2(%arg0: i32) -> (i32, i32) {
    %c0_i32 = arith.constant 0 : i32
    %c0_i32_0 = arith.constant 0 : i32
    %c0_i32_1 = arith.constant 0 : i32
    return %c0_i32, %c0_i32_0 : i32, i32
  }
  func.func @transform_3(%arg0: i32) -> (i32, i32, i32) {
    %c0_i32 = arith.constant 0 : i32
    %c0_i32_0 = arith.constant 0 : i32
    %c0_i32_1 = arith.constant 0 : i32
    return %arg0, %c0_i32, %c0_i32_0 : i32, i32, i32
  }
}

</mosaic_0001>

<bundles_post_ra>
// kernel: tpu_custom_call.1
= control target key start
LH: loop header
LB: loop body
LE: loop exit
PB: predicated region body
PF: predicated region fallthrough
CT: control target
= control target key end

     0   :  { %vm43_vm0 = vcmask 64512   ;;  %v284_v3 = vmov 0   ;;  %vm141_vm1 = vcmask 130048   ;;  %s375_s0 = inlined_call_operand.vmem [shape: f32[2,8,16], index: 0, kind: input, shape index: {}]   ;;  %s376_s1 = inlined_call_operand.vmem [shape: f32[32,8], index: 1, kind: input, shape index: {}]   ;;  %s377_s2 = inlined_call_operand.vmem [shape: f32[32,1], index: 2, kind: input, shape index: {}]   ;;  %s378_s3 = inlined_call_operand.vmem [shape: f32[2,32,16], index: 3, kind: output, shape index: {}]  }
   0x1   :  { %v22_v0 = vld [vmem:[%s375_s0] sm:$0xff]  ;;  %v246_v1 = vld [vmem:[%s375_s0 + $0x8] sm:$0xff]  ;;  %282 = vset.pattern.permute.xlu0 %v284_v3  ;;  %283 = vset.pattern.permute.xlu1 %v284_v3  ;;  %v16_v5 = vld [vmem:[%s376_s1 + $0x10] sm:$0xff] }
   0x2   :  { %v14_v2 = vld [vmem:[%s376_s1] sm:$0xff]  ;;  %265 = vmatprep.subr.mxu0 %v22_v0  ;;  %273 = vmatprep.subr.mxu1 %v246_v1  ;;  %v15_v4 = vld [vmem:[%s376_s1 + $0x8] sm:$0xff]  ;;  %v20_v7 = vld [vmem:[%s377_s2 + $0x10] sm:$0xff] }
   0x3   :  { %266 = vmatpush3.msra.mxu0 %v22_v0  ;;  %267 = vmatprep.mubr.msk.f32.mxu0 %vm43_vm0, %v14_v2  ;;  %v18_v6 = vld [vmem:[%s377_s2] sm:$0xff]  ;;  %v17_v8 = vld [vmem:[%s376_s1 + $0x18] sm:$0xff]  ;;  %v19_v9 = vld [vmem:[%s377_s2 + $0x8] sm:$0xff] }
   0x4   :  { %274 = vmatpush3.msra.mxu1 %v246_v1  ;;  %275 = vmatprep.mubr.msk.f32.mxu1 %vm43_vm0, %v14_v2  ;;  %v21_v10 = vld [vmem:[%s377_s2 + $0x18] sm:$0xff] }
   0x5   :  { %268 = vmatmul.mubr.msk.f32.vlgmr.msra.gmra.mxu0 %vm43_vm0, %v15_v4  ;;  %276 = vmatmul.mubr.msk.f32.vlgmr.msra.gmra.mxu1 %vm43_vm0, %v15_v4 }
   0x6   :  { %270 = vmatprep.mubr.msk.f32.mxu0 %vm43_vm0, %v16_v5  ;;  %278 = vmatprep.mubr.msk.f32.mxu1 %vm43_vm0, %v16_v5 }
   0x7   :  { %25 = vperm.xlu0 %282, %v18_v6   ;;  %35 = vperm.xlu1 %283, %v20_v7  }
   0x9   :  { %271 = vmatmul.mubr.msk.f32.gmra.mxu0 %vm43_vm0, %v17_v8  ;;  %279 = vmatmul.mubr.msk.f32.gmra.mxu1 %vm43_vm0, %v17_v8 }
   0xb   :  { %30 = vperm.xlu0 %282, %v19_v9   ;;  %40 = vperm.xlu1 %283, %v21_v10  }
  0x82   :  { %v26_v11 = vpop.permute.xlu0 %25  ;;  %v36_v12 = vpop.permute.xlu1 %35 }
  0x86   :  { %v31_v13 = vpop.permute.xlu0 %30  ;;  %v41_v20 = vpop.permute.xlu1 %40 }
  0xc5   :  { %v269_v14 = vpop.f32.mrf.mxu0  ;;  %v277_v15 = vpop.f32.mrf.mxu1 }
  0xc6   :  { %v128_v16 = vadd.f32 %v269_v14, %v31_v13  ;;  %v220_v17 = vadd.f32 %v277_v15, %v31_v13 }
  0xc7   :  { %v122_v18 = vpop.f32.mrf.mxu0  ;;  %v214_v19 = vpop.f32.mrf.mxu1 }
  0xc8   :  { %143 = vst.msk [vmem:[%s378_s3 + $0x8] sm:$0xff] %vm141_vm1, %v128_v16  ;;  %252 = vst.msk [vmem:[%s378_s3 + $0x28] sm:$0xff] %vm141_vm1, %v220_v17  ;;  %v123_v21 = vadd.f32 %v122_v18, %v26_v11  ;;  %v215_v22 = vadd.f32 %v214_v19, %v26_v11 }
  0xc9   :  { %v272_v23 = vpop.f32.mrf.mxu0  ;;  %v280_v24 = vpop.f32.mrf.mxu1 }
  0xca   :  { %142 = vst.msk [vmem:[%s378_s3] sm:$0xff] %vm141_vm1, %v123_v21  ;;  %251 = vst.msk [vmem:[%s378_s3 + $0x20] sm:$0xff] %vm141_vm1, %v215_v22  ;;  %v138_v25 = vadd.f32 %v272_v23, %v41_v20  ;;  %v230_v26 = vadd.f32 %v280_v24, %v41_v20 }
  0xcb   :  { %v132_v27 = vpop.f32.mrf.mxu0  ;;  %v224_v28 = vpop.f32.mrf.mxu1 }
  0xcc   :  { %145 = vst.msk [vmem:[%s378_s3 + $0x18] sm:$0xff] %vm141_vm1, %v138_v25  ;;  %254 = vst.msk [vmem:[%s378_s3 + $0x38] sm:$0xff] %vm141_vm1, %v230_v26  ;;  %v133_v29 = vadd.f32 %v132_v27, %v36_v12  ;;  %v225_v30 = vadd.f32 %v224_v28, %v36_v12 }
  0xce   :  { %144 = vst.msk [vmem:[%s378_s3 + $0x10] sm:$0xff] %vm141_vm1, %v133_v29  ;;  %253 = vst.msk [vmem:[%s378_s3 + $0x30] sm:$0xff] %vm141_vm1, %v225_v30 }

</bundles_post_ra>
